<compile_context>
chip_gen: v5e
topology: v5e:2x2
jax: 0.10.0
libtpu: 0.0.40
codegen_flags: <defaults>
</compile_context>

<pallas_src>
import functools

import jax
import jax.numpy as jnp
from jax.experimental import pallas as pl
from jax.experimental.pallas import tpu as pltpu


# --------------------------------------------------------------------------
# Fused kernel: pool (sum over M,T,V) -> fc -> per-sample cross-entropy
# --------------------------------------------------------------------------
def _fused_head_kernel(x_ref, w_ref, b_ref, label_ref,
                       score_ref, loss_ref, acc_ref,
                       *, inv_pool, num_classes):
    """One (batch-tile i, person m) grid step.

    x_ref:     (TN, C, T*V)   one person's slab for TN samples (M dim squeezed)
    w_ref:     (C, Kp)        fc weight, K padded to lane-dense Kp (mult of 128)
    b_ref:     (1, Kp)        fc bias (padded)
    label_ref: (TN, 1) int32  class labels
    score_ref: (TN, Kp)       logits out (valid columns are [0, num_classes))
    loss_ref:  (TN, 1)        per-sample CE out
    acc_ref:   (TN, C) f32    running pooled-sum accumulator (VMEM scratch)
    """
    m = pl.program_id(1)

    @pl.when(m == 0)
    def _():
        acc_ref[...] = jnp.zeros_like(acc_ref)

    # Partial pooled sum over T*V (lane reduce) for this person; accumulate the
    # person (M) axis across the "arbitrary" grid dimension in f32.
    acc_ref[...] += jnp.sum(x_ref[...], axis=-1, dtype=jnp.float32)

    @pl.when(m == pl.num_programs(1) - 1)
    def _():
        # Apply the mean scale exactly once, on the small pooled tile.
        pooled = acc_ref[...] * inv_pool                               # (TN, C)
        logits = jnp.dot(pooled, w_ref[...].astype(jnp.float32),
                         preferred_element_type=jnp.float32)
        logits = logits + b_ref[...].astype(jnp.float32)               # (TN, Kp)
        score_ref[...] = logits.astype(score_ref.dtype)

        # Softmax cross-entropy on the valid class columns only; padded columns
        # (which hold exactly 0 since w/b are zero-padded) are masked to -inf.
        tn, kp = logits.shape
        col = jax.lax.broadcasted_iota(jnp.int32, (tn, kp), 1)
        masked = jnp.where(col < num_classes, logits, jnp.float32(-1e30))
        mmax = jnp.max(masked, axis=-1, keepdims=True)                 # (TN, 1)
        lse = mmax + jnp.log(jnp.sum(jnp.exp(masked - mmax), axis=-1,
                                     keepdims=True))                   # (TN, 1)
        one_hot = (col == label_ref[...]).astype(jnp.float32)          # (TN, Kp)
        picked = jnp.sum(one_hot * logits, axis=-1, keepdims=True)     # (TN, 1)
        loss_ref[...] = lse - picked


# --------------------------------------------------------------------------
# Wrapper
# --------------------------------------------------------------------------
def base_head_forward_and_ce(x, w, b, label):
    """x: (N, M, C, T, V), w: (C, K), b: (K,), label: (N,) int.

    Returns (cls_score (N, K) f32, per_sample_ce (N,) f32).
    """
    N, M, C, T, V = x.shape
    K = w.shape[1]
    TV = T * V
    Kp = 128 * pl.cdiv(K, 128)

    # Merge the trailing contiguous (T, V) dims — a metadata-only reshape, NOT a
    # transpose: no extra HBM read/write of x before the kernel.
    xr = x.reshape(N, M, C, TV)

    # Lane-dense fc params / logits: pad num_classes to a multiple of 128.
    wp = jnp.pad(w, ((0, 0), (0, Kp - K)))
    bp = jnp.pad(b, (0, Kp - K)).reshape(1, Kp)
    lbl = label.reshape(N, 1).astype(jnp.int32)

    # Batch tile: second-minor dim of the (TN, Kp)/(TN, 1) outputs must be a
    # multiple of 8 or equal the full dim.
    TN = 8 if N % 8 == 0 else N
    n_tiles = N // TN

    kernel = functools.partial(_fused_head_kernel,
                               inv_pool=1.0 / float(M * T * V),
                               num_classes=K)

    score_p, per_sample_ce = pl.pallas_call(
        kernel,
        out_shape=(jax.ShapeDtypeStruct((N, Kp), jnp.float32),
                   jax.ShapeDtypeStruct((N, 1), jnp.float32)),
        grid_spec=pltpu.PrefetchScalarGridSpec(
            num_scalar_prefetch=0,
            grid=(n_tiles, M),                       # batch tiles, then persons
            in_specs=[
                # Native layout: (TN, 1, C, T*V) block, M dim squeezed in-kernel.
                pl.BlockSpec((TN, None, C, TV), lambda i, m: (i, m, 0, 0)),
                pl.BlockSpec((C, Kp), lambda i, m: (0, 0)),
                pl.BlockSpec((1, Kp), lambda i, m: (0, 0)),
                pl.BlockSpec((TN, 1), lambda i, m: (i, 0)),
            ],
            out_specs=(
                pl.BlockSpec((TN, Kp), lambda i, m: (i, 0)),
                pl.BlockSpec((TN, 1), lambda i, m: (i, 0)),
            ),
            scratch_shapes=[pltpu.VMEM((TN, C), jnp.float32)],
        ),
        compiler_params=pltpu.CompilerParams(
            dimension_semantics=("parallel", "arbitrary")),
    )(xr, wp, bp, lbl)

    return score_p[:, :K], per_sample_ce[:, 0]


def base_head_ce_loss(per_sample_ce):
    """Mean CE loss (loss_cls_1 in BaseHead.loss), scalar."""
    return per_sample_ce.mean()


# --------------------------------------------------------------------------
# Pure-JAX references (for correctness check)
# --------------------------------------------------------------------------
def _ref_forward(x, w, b):
    pooled = x.astype(jnp.float32).mean(axis=(1, 3, 4))      # (N, C)
    return pooled @ w.astype(jnp.float32) + b.astype(jnp.float32)


def _ref_ce(score, label):
    score = score.astype(jnp.float32)
    lse = jax.nn.logsumexp(score, axis=-1)
    picked = jnp.take_along_axis(score, label[:, None], axis=-1)[:, 0]
    return jnp.mean(lse - picked)


# --------------------------------------------------------------------------
if __name__ == "__main__":
    # Config implied by BaseHead.__init__ (joint_cfg='nturgb+d' -> V=25 joints)
    num_classes = 16
    in_channels = 32
    N, M, T, V = 2, 2, 8, 25          # small shapes

    key = jax.random.PRNGKey(0)
    kx, kw, kl = jax.random.split(key, 3)

    x = jax.random.normal(kx, (N, M, in_channels, T, V), dtype=jnp.float32)
    # Deterministic "normal_init(std=0.01)" fc weights, zero bias.
    w_fc = 0.01 * jax.random.normal(kw, (in_channels, num_classes), dtype=jnp.float32)
    b_fc = jnp.zeros((num_classes,), dtype=jnp.float32)
    label = jax.random.randint(kl, (N,), 0, num_classes, dtype=jnp.int32)

    cls_score, per_sample_ce = base_head_forward_and_ce(x, w_fc, b_fc, label)
    loss_cls_1 = base_head_ce_loss(per_sample_ce)
    jax.block_until_ready((cls_score, loss_cls_1))

    # Verify against pure-JAX reference.
    ref_score = _ref_forward(x, w_fc, b_fc)
    ref_loss = _ref_ce(ref_score, label)
    assert jnp.allclose(cls_score, ref_score, atol=1e-4, rtol=1e-4), "forward mismatch"
    assert jnp.allclose(loss_cls_1, ref_loss, atol=1e-4, rtol=1e-4), "loss mismatch"

    print("KERNEL_OK")
</pallas_src>

<mosaic_0001>
module attributes {stable_mosaic.version = 11 : i64} {
  func.func @_fused_head_kernel(%arg0: i32, %arg1: i32, %arg2: memref<2x1x32x200xf32, #tpu.memory_space<vmem>>, %arg3: memref<32x128xf32, #tpu.memory_space<vmem>>, %arg4: memref<1x128xf32, #tpu.memory_space<vmem>>, %arg5: memref<2x1xi32, #tpu.memory_space<vmem>>, %arg6: memref<2x128xf32, #tpu.memory_space<vmem>>, %arg7: memref<2x1xf32, #tpu.memory_space<vmem>>, %arg8: memref<2x32xf32, #tpu.memory_space<vmem>>) attributes {dimension_semantics = [#tpu.dimension_semantics<parallel>, #tpu.dimension_semantics<arbitrary>], iteration_bounds = array<i64: 1, 2>, scalar_prefetch = 0 : i64, scratch_operands = 1 : i64, tpu.core_type = #tpu.core_type<tc>, window_params = [{transform_indices = @transform_0, window_bounds = array<i64: 2, 1, 32, 200>}, {pipeline_mode = #tpu.pipeline_mode<synchronous>, transform_indices = @transform_1, window_bounds = array<i64: 32, 128>}, {pipeline_mode = #tpu.pipeline_mode<synchronous>, transform_indices = @transform_2, window_bounds = array<i64: 1, 128>}, {transform_indices = @transform_3, window_bounds = array<i64: 2, 1>}, {transform_indices = @transform_4, window_bounds = array<i64: 2, 128>}, {transform_indices = @transform_5, window_bounds = array<i64: 2, 1>}]} {
    %c0_i32 = arith.constant 0 : i32
    %0 = arith.cmpi eq, %arg1, %c0_i32 : i32
    %1 = arith.extui %0 : i1 to i32
    %c0_i32_0 = arith.constant 0 : i32
    %2 = arith.cmpi ne, %1, %c0_i32_0 : i32
    scf.if %2 {
      %cst_9 = arith.constant 0.000000e+00 : f32
      %12 = vector.broadcast %cst_9 : f32 to vector<2x32xf32>
      %c0_10 = arith.constant 0 : index
      %c0_11 = arith.constant 0 : index
      %13 = vector.load %arg8[%c0_10, %c0_11] : memref<2x32xf32, #tpu.memory_space<vmem>>, vector<2x32xf32>
      tpu.vector_store %arg8[%c0_10, %c0_11], %12 {strides = array<i32>} : memref<2x32xf32, #tpu.memory_space<vmem>>, vector<2x32xf32>,
    } else {
    }
    %c0 = arith.constant 0 : index
    %c0_1 = arith.constant 0 : index
    %3 = vector.load %arg8[%c0, %c0_1] : memref<2x32xf32, #tpu.memory_space<vmem>>, vector<2x32xf32>
    %c0_2 = arith.constant 0 : index
    %c0_3 = arith.constant 0 : index
    %c0_4 = arith.constant 0 : index
    %c0_5 = arith.constant 0 : index
    %4 = vector.load %arg2[%c0_2, %c0_3, %c0_4, %c0_5] : memref<2x1x32x200xf32, #tpu.memory_space<vmem>>, vector<2x1x32x200xf32>
    %5 = vector.shape_cast %4 : vector<2x1x32x200xf32> to vector<2x32x200xf32>
    %cst = arith.constant dense<0.000000e+00> : vector<2x32xf32>
    %6 = vector.multi_reduction <add>, %5, %cst [2] : vector<2x32x200xf32> to vector<2x32xf32>
    %7 = arith.addf %3, %6 : vector<2x32xf32>
    %c0_6 = arith.constant 0 : index
    %c0_7 = arith.constant 0 : index
    %8 = vector.load %arg8[%c0_6, %c0_7] : memref<2x32xf32, #tpu.memory_space<vmem>>, vector<2x32xf32>
    tpu.vector_store %arg8[%c0_6, %c0_7], %7 {strides = array<i32>} : memref<2x32xf32, #tpu.memory_space<vmem>>, vector<2x32xf32>,
    %c1_i32 = arith.constant 1 : i32
    %9 = arith.cmpi eq, %arg1, %c1_i32 : i32
    %10 = arith.extui %9 : i1 to i32
    %c0_i32_8 = arith.constant 0 : i32
    %11 = arith.cmpi ne, %10, %c0_i32_8 : i32
    scf.if %11 {
      %c0_9 = arith.constant 0 : index
      %c0_10 = arith.constant 0 : index
      %12 = vector.load %arg8[%c0_9, %c0_10] : memref<2x32xf32, #tpu.memory_space<vmem>>, vector<2x32xf32>
      %cst_11 = arith.constant 2.500000e-03 : f32
      %13 = vector.broadcast %cst_11 : f32 to vector<2x32xf32>
      %14 = arith.mulf %12, %13 : vector<2x32xf32>
      %c0_12 = arith.constant 0 : index
      %c0_13 = arith.constant 0 : index
      %15 = vector.load %arg3[%c0_12, %c0_13] : memref<32x128xf32, #tpu.memory_space<vmem>>, vector<32x128xf32>
      %cst_14 = arith.constant dense<0.000000e+00> : vector<2x128xf32>
      %16 = tpu.matmul %14, %15, %cst_14 {dimension_numbers = #tpu.dot_dimension_numbers<[1], [0], [0], [1], [0, 0, 1, 1], [], []>} : vector<2x32xf32>, vector<32x128xf32>, vector<2x128xf32> -> vector<2x128xf32>
      %c0_15 = arith.constant 0 : index
      %c0_16 = arith.constant 0 : index
      %17 = vector.load %arg4[%c0_15, %c0_16] : memref<1x128xf32, #tpu.memory_space<vmem>>, vector<1x128xf32>
      %18 = vector.broadcast %17 : vector<1x128xf32> to vector<2x128xf32>
      %19 = arith.addf %16, %18 : vector<2x128xf32>
      %c0_17 = arith.constant 0 : index
      %c0_18 = arith.constant 0 : index
      %20 = vector.load %arg6[%c0_17, %c0_18] : memref<2x128xf32, #tpu.memory_space<vmem>>, vector<2x128xf32>
      tpu.vector_store %arg6[%c0_17, %c0_18], %19 {strides = array<i32>} : memref<2x128xf32, #tpu.memory_space<vmem>>, vector<2x128xf32>,
      %21 = tpu.iota {dimensions = array<i32: 1>} : vector<2x128xi32>
      %c16_i32 = arith.constant 16 : i32
      %22 = vector.broadcast %c16_i32 : i32 to vector<2x128xi32>
      %23 = arith.cmpi slt, %21, %22 : vector<2x128xi32>
      %cst_19 = arith.constant -1.000000e+30 : f32
      %24 = vector.broadcast %cst_19 : f32 to vector<2x128xf32>
      %25 = arith.select %23, %19, %24 : vector<2x128xi1>, vector<2x128xf32>
      %cst_20 = arith.constant dense<0xFF800000> : vector<2xf32>
      %26 = vector.multi_reduction <maximumf>, %25, %cst_20 [1] : vector<2x128xf32> to vector<2xf32>
      %27 = vector.shape_cast %26 : vector<2xf32> to vector<2x1xf32>
      %28 = vector.broadcast %27 : vector<2x1xf32> to vector<2x128xf32>
      %29 = arith.subf %25, %28 : vector<2x128xf32>
      %30 = math.exp %29 : vector<2x128xf32>
      %cst_21 = arith.constant dense<0.000000e+00> : vector<2xf32>
      %31 = vector.multi_reduction <add>, %30, %cst_21 [1] : vector<2x128xf32> to vector<2xf32>
      %32 = vector.shape_cast %31 : vector<2xf32> to vector<2x1xf32>
      %33 = math.log %32 : vector<2x1xf32>
      %34 = arith.addf %27, %33 : vector<2x1xf32>
      %c0_22 = arith.constant 0 : index
      %c0_23 = arith.constant 0 : index
      %35 = vector.load %arg5[%c0_22, %c0_23] : memref<2x1xi32, #tpu.memory_space<vmem>>, vector<2x1xi32>
      %36 = vector.broadcast %35 : vector<2x1xi32> to vector<2x128xi32>
      %37 = arith.cmpi eq, %21, %36 : vector<2x128xi32>
      %38 = arith.extui %37 : vector<2x128xi1> to vector<2x128xi32>
      %39 = arith.sitofp %38 : vector<2x128xi32> to vector<2x128xf32>
      %40 = arith.mulf %39, %19 : vector<2x128xf32>
      %cst_24 = arith.constant dense<0.000000e+00> : vector<2xf32>
      %41 = vector.multi_reduction <add>, %40, %cst_24 [1] : vector<2x128xf32> to vector<2xf32>
      %42 = vector.shape_cast %41 : vector<2xf32> to vector<2x1xf32>
      %43 = arith.subf %34, %42 : vector<2x1xf32>
      %c0_25 = arith.constant 0 : index
      %c0_26 = arith.constant 0 : index
      %44 = vector.load %arg7[%c0_25, %c0_26] : memref<2x1xf32, #tpu.memory_space<vmem>>, vector<2x1xf32>
      tpu.vector_store %arg7[%c0_25, %c0_26], %43 {strides = array<i32>} : memref<2x1xf32, #tpu.memory_space<vmem>>, vector<2x1xf32>,
    } else {
    }
    return
  }
  func.func @transform_0(%arg0: i32, %arg1: i32) -> (i32, i32, i32, i32) {
    %c0_i32 = arith.constant 0 : i32
    %c0_i32_0 = arith.constant 0 : i32
    %c0_i32_1 = arith.constant 0 : i32
    return %arg0, %arg1, %c0_i32, %c0_i32_0 : i32, i32, i32, i32
  }
  func.func @transform_1(%arg0: i32, %arg1: i32) -> (i32, i32) {
    %c0_i32 = arith.constant 0 : i32
    %c0_i32_0 = arith.constant 0 : i32
    %c0_i32_1 = arith.constant 0 : i32
    return %c0_i32, %c0_i32_0 : i32, i32
  }
  func.func @transform_2(%arg0: i32, %arg1: i32) -> (i32, i32) {
    %c0_i32 = arith.constant 0 : i32
    %c0_i32_0 = arith.constant 0 : i32
    %c0_i32_1 = arith.constant 0 : i32
    return %c0_i32, %c0_i32_0 : i32, i32
  }
  func.func @transform_3(%arg0: i32, %arg1: i32) -> (i32, i32) {
    %c0_i32 = arith.constant 0 : i32
    %c0_i32_0 = arith.constant 0 : i32
    return %arg0, %c0_i32 : i32, i32
  }
  func.func @transform_4(%arg0: i32, %arg1: i32) -> (i32, i32) {
    %c0_i32 = arith.constant 0 : i32
    %c0_i32_0 = arith.constant 0 : i32
    return %arg0, %c0_i32 : i32, i32
  }
  func.func @transform_5(%arg0: i32, %arg1: i32) -> (i32, i32) {
    %c0_i32 = arith.constant 0 : i32
    %c0_i32_0 = arith.constant 0 : i32
    return %arg0, %c0_i32 : i32, i32
  }
}

</mosaic_0001>

<bundles_post_ra>
// kernel: tpu_custom_call.1
= control target key start
LH: loop header
LB: loop body
LE: loop exit
PB: predicated region body
PF: predicated region fallthrough
CT: control target
= control target key end

     0   :  { %11 = vsyncpa [#allocation4], 0  ;;  %s1066_s0 = inlined_call_operand.hbm [shape: f32[2,2,32,200], index: 0, kind: input, shape index: {}]   ;;  %s1067_s1 = inlined_call_operand.hbm [shape: f32[32,128], index: 1, kind: input, shape index: {}]   ;;  %s1068_s2 = inlined_call_operand.vmem [shape: f32[1,128], index: 2, kind: input, shape index: {}]   ;;  %s1069_s3 = inlined_call_operand.vmem [shape: s32[2,1], index: 3, kind: input, shape index: {}]   ;;  %s1070_s4 = inlined_call_operand.hbm [shape: f32[2,128], index: 4, kind: output, shape index: {0}]   ;;  %s1071_s5 = inlined_call_operand.vmem [shape: f32[2,1], index: 5, kind: output, shape index: {1}]  }
   0x1   :  { %13 = vsyncpa [#allocation4 + $0x1], 0 }
   0x2   :  { %14 = vsyncpa [#allocation7], 0 }
   0x3   :  { %15 = vsyncpa [#allocation5], 0  ;;  %s890_s18 = smov 0   ;;  %s892_s19 = smov 0  }
   0x4   :  { %s894_s20 = smov 0   ;;  %s896_s21 = smov 0  }
   0x5   :  { %s898_s22 = smov 0   ;;  %s900_s23 = smov 0  }
   0x6 LB: > { %s614_s24 = sadd.s32 4294967295, %s845_s23   ;;  %s30_s25 = sadd.s32 1, %s841_s22  ;;  %s845_s23 = sphi %s900_s23, %s21_s23   ;;  %s841_s22 = sphi %s898_s22, %s1080_s22   ;;  %s837_s21 = sphi %s896_s21, %s1079_s21   ;;  %s833_s20 = sphi %s894_s20, %s1078_s20   ;;  %s829_s19 = sphi %s892_s19, %s1077_s19   ;;  %s825_s18 = sphi %s890_s18, %s1076_s18  }
   0x7   : > { %p31_p0 = scmp.ge.s32.totalorder %s30_s25, 2  ;;  %s42_s26 = sadd.s32 1, %s833_s20 }
   0x8   : > { %p49_p1 = scmp.ne.s32.totalorder %s833_s20, %s829_s19  ;;  %p50_p2 = scmp.eq.s32.totalorder %s845_s23, 0 }
   0x9   : > { %s1082_s25 = smov (%p31_p0, %s30_s25), 0  ;;  %p55_p4 = scmp.ne.s32.totalorder %s829_s19, %s825_s18 }
   0xa   : > { %p926_p3 = por %p50_p2, %p49_p1  ;;  %s38_s28 = ssub.s32 %s841_s22, %s1082_s25 }
   0xb   : > { %p935_p5 = scmp.eq.s32.totalorder %s614_s24, 0  ;;  %p40_p6 = scmp.eq.s32.totalorder %s38_s28, 0 }
   0xc   : > { %p615_p7 = scmp.ge.s32.totalorder %s845_s23, 1  ;;  %p186_p9 = scmp.lt.s32.totalorder %s845_s23, 3 }
   0xd   : > { %p942_p8 = por %p935_p5, %p55_p4  ;;  %s197_s10 = sshll.u32 %s1067_s1, 4  ;;  %s198_s10 = int_to_ptr.hbm [resolvable:$true] %s197_s10 }
   0xe   : > { %s948_s6 = scalar_select %p40_p6, %s833_s20, %s42_s26  }
   0xf   : > { %p950_p10 = pnand %p615_p7, %p186_p9  ;;  %s847_s11 = smov [#allocation6]  }
  0x10   : > { %s199_s12 = sshll.u32 %s847_s11, 4  ;;  %s848_s13 = smov 128   ;;  %s200_s12 = int_to_ptr.vmem [resolvable:$true] %s199_s12 }
  0x11   : > { %p654_p11 = pneg %p950_p10  ;;  %s849_s14 = smov 8  }
  0x12   : > { %p618_p13 = scmp.ge.s32.totalorder %s845_s23, 2 }
  0x13   : > { %p655_p12 = pnand %p654_p11, %p935_p5 }
  0x14   : > { %219 = sbr.rel (%p618_p13) target bundleno = 39 (0x27), region = 28 }
  0x15   : > { %657 = dma.hbm_to_vmem [thread:$0]  (!%p655_p12), %s198_s10, 512, %s200_s12, [#allocation7], %s848_s13, %s848_s13, %s849_s14  }
  0x19   : > { %s223_s15 = sand.u32 1, %s833_s20   ;;  %s636_s16 = sshll.u32 %s841_s22, 6 }
  0x1a   : > { %s619_s17 = sshll.u32 %s223_s15, 7  ;;  %s235_s28 = scalar_lea.hbm %s1066_s0, %s636_s16 }
  0x1b   : > { %s639_s8 = scalar_select %p926_p3, [#allocation0], [#allocation11] }
  0x1c   : > { %s248_s9 = sshll.u32 %s235_s28, 4  ;;  %s227_s10 = scalar_lea.vmem [#allocation3], %s619_s17  ;;  %s249_s9 = int_to_ptr.hbm [resolvable:$true] %s248_s9 }
  0x1d   : > { %s250_s11 = sshll.u32 %s227_s10, 4  ;;  %s240_s12 = sld [smem:[%s639_s8]]   ;;  %s251_s11 = int_to_ptr.vmem [resolvable:$true] %s250_s11 }
  0x1e   : > { %s850_s13 = smov 2048   ;;  %s851_s14 = smov 1024  }
  0x1f   : > { %640 = sst [smem:[#allocation10]] (%p926_p3), %s850_s13  ;;  %s852_s18 = smov 4  }
  0x20   : > { %641 = sst [smem:[#allocation10 + $0x1]] (%p926_p3), %s851_s14  ;;  %s853_s16 = smov 256  }
  0x21   : > { %642 = sst [smem:[#allocation10 + $0x2]] (%p926_p3), %s852_s18  ;;  %s854_s28 = smov 16  }
  0x22   : > { %643 = sst [smem:[#allocation10 + $0x3]] (%p926_p3), %s853_s16  ;;  %s224_s8 = scalar_lea.sflag [#allocation4], %s223_s15 }
  0x23   : > { %s622_s26 = sshll.u32 %s240_s12, 26  ;;  %644 = sst [smem:[#allocation10 + $0x4]] (%p926_p3), %s853_s16 }
  0x24   : > { %s623_s17 = sadd.s32 134217728, %s622_s26  ;;  %645 = sst [smem:[#allocation10 + $0x5]] (%p926_p3), %s854_s28 }
  0x25   : > { %s855_s10 = smov [#allocation9]  }
  0x26   : > { %646 = dma.general (%p926_p3), %s249_s9, 2048, %s251_s11, %s224_s8, %s855_s10, [#allocation10], %s623_s17, 0  }
  0x27 PF: > { %275 = sbr.rel (%p950_p10) target bundleno = 604 (0x25c), region = 36  ;;  %s277_s13 = sand.u32 (!%p950_p10), 1, %s829_s19  }
  0x28   : > { %s625_s14 = sshll.u32 (!%p950_p10), %s277_s13, 7  ;;  %s278_s18 = scalar_lea.sflag (!%p950_p10), [#allocation4], %s277_s13 }
  0x29   : > { %s986_s12 = scalar_lea.vmem (!%p950_p10), [#allocation3], %s625_s14 }
  0x2c   : > { %812 = dma.done.wait (%p942_p8), %s278_s18, 2048  }
  0x2d   : > { %814 = vsyncadd (%p942_p8), %s278_s18, 4294965248 }
  0x2e   : > { %816 = dma.done.wait (%p935_p5), [#allocation7], 512  }
  0x2f   : > { %818 = vsyncadd (%p935_p5), [#allocation7], 4294966784  ;;  %p627_p0 = scmp.ne.s32.totalorder %s837_s21, 0 }
  0x31   : > { %329 = sbr.rel (%p627_p0) target bundleno = 56 (0x38), region = 48 }
  0x36   : > { %vm330_vm0 = vcmask 254976   ;;  %v856_v0 = vmov 0.0  }
  0x37   : > { %331 = vst.msk [vmem:[#allocation2] sm:$0x3] %vm330_vm0, %v856_v0 }
  0x38 PF: > { %v341_v1 = vld [vmem:[%s986_s12 + $0x40] sm:$0xff]  ;;  %v342_v2 = vld [vmem:[%s986_s12 + $0x48] sm:$0xff]  ;;  %vm349_vm1 = vcmask 588800   ;;  %v344_v11 = vld [vmem:[%s986_s12 + $0x58] sm:$0xff]  ;;  %v390_v34 = vlaneseq  ;;  %vm395_vm2 = vcmask 130112   ;;  %vm399_vm3 = vcmask 195712  }
  0x39   : > { %v333_v3 = vld [vmem:[%s986_s12] sm:$0xff]  ;;  %v366_v4 = vsel %vm349_vm1, %v342_v2, 0.0  ;;  %v334_v5 = vld [vmem:[%s986_s12 + $0x8] sm:$0xff]  ;;  %v336_v14 = vld [vmem:[%s986_s12 + $0x18] sm:$0xff]  ;;  %v370_v17 = vsel %vm349_vm1, %v344_v11, 0.0  ;;  %vm403_vm4 = vcmask 261312  }
  0x3a   : > { %v337_v6 = vld [vmem:[%s986_s12 + $0x20] sm:$0xff]  ;;  %v338_v7 = vld [vmem:[%s986_s12 + $0x28] sm:$0xff]  ;;  %v367_v8 = vadd.f32 %v366_v4, %v341_v1  ;;  %v350_v9 = vsel %vm349_vm1, %v334_v5, 0.0  ;;  %v343_v16 = vld [vmem:[%s986_s12 + $0x50] sm:$0xff]  ;;  %v354_v19 = vsel %vm349_vm1, %v336_v14, 0.0  ;;  %v1021_v37 = vand.u32 127, %v390_v34 }
  0x3b   : > { %v358_v10 = vsel %vm349_vm1, %v338_v7, 0.0  ;;  %v351_v12 = vadd.f32 %v350_v9, %v333_v3  ;;  %v346_v15 = vld [vmem:[%s986_s12 + $0x68] sm:$0xff]  ;;  %v335_v18 = vld [vmem:[%s986_s12 + $0x10] sm:$0xff]  ;;  %v345_v20 = vld [vmem:[%s986_s12 + $0x60] sm:$0xff]  ;;  %v371_v22 = vadd.f32 %v370_v17, %v343_v16  ;;  %vm412_vm5 = vcmask 1041409   ;;  %p628_p1 = scmp.ne.s32.totalorder %s837_s21, 1 }
  0x3c   : > { %v359_v13 = vadd.f32 %v358_v10, %v337_v6  ;;  %368 = vadd.xlane.f32.xlu1 %v367_v8  ;;  %v374_v21 = vsel %vm349_vm1, %v346_v15, 0.0  ;;  %v355_v23 = vadd.f32 %v354_v19, %v335_v18  ;;  %v348_v25 = vld [vmem:[%s986_s12 + $0x78] sm:$0xff]  ;;  %v347_v27 = vld [vmem:[%s986_s12 + $0x70] sm:$0xff]  ;;  %v393_v38 = vadd.s32 4294967288, %v1021_v37 }
  0x3d   : > { %352 = vadd.xlane.f32.xlu0 %v351_v12  ;;  %v375_v24 = vadd.f32 %v374_v21, %v345_v20  ;;  %v340_v26 = vld [vmem:[%s986_s12 + $0x38] sm:$0xff]  ;;  %v378_v28 = vsel %vm349_vm1, %v348_v25, 0.0  ;;  %v339_v29 = vld [vmem:[%s986_s12 + $0x30] sm:$0xff]  ;;  %v397_v43 = vadd.s32 4294967280, %v1021_v37  ;;  %v401_v46 = vadd.s32 4294967272, %v1021_v37 }
  0x3e   : > { %360 = vadd.xlane.f32.xlu2 %v359_v13  ;;  %v362_v30 = vsel %vm349_vm1, %v340_v26, 0.0  ;;  %v379_v31 = vadd.f32 %v378_v28, %v347_v27  ;;  %v332_v59 = vld [vmem:[#allocation2] sm:$0x3]  ;;  %vm416_vm6 = vcmask 254976  }
  0x3f   : > { %v363_v32 = vadd.f32 %v362_v30, %v339_v29 }
  0x44   : > { %372 = vadd.xlane.f32.xlu1 %v371_v22 }
  0x45   : > { %356 = vadd.xlane.f32.xlu0 %v355_v23 }
  0x46   : > { %376 = vadd.xlane.f32.xlu2 %v375_v24 }
  0x4c   : > { %380 = vadd.xlane.f32.xlu1 %v379_v31 }
  0x4d   : > { %364 = vadd.xlane.f32.xlu0 %v363_v32 }
  0xaf   : > { %v369_v33 = vpop.xlane.xlu1 %368 }
  0xb0   : > { %v353_v35 = vpop.xlane.xlu0 %352  ;;  %v405_v45 = vperm.slane %v369_v33, %v1021_v37 }
  0xb1   : > { %v361_v36 = vpop.xlane.xlu2 %360  ;;  %v392_v47 = vperm.slane %v353_v35, %v1021_v37 }
  0xb2   : > { %v398_v52 = vperm.slane %v361_v36, %v397_v43 }
  0xb7   : > { %v373_v39 = vpop.xlane.xlu1 %372 }
  0xb8   : > { %v357_v40 = vpop.xlane.xlu0 %356  ;;  %v406_v41 = vperm.slane %v373_v39, %v393_v38 }
  0xb9   : > { %v377_v42 = vpop.xlane.xlu2 %376  ;;  %v394_v44 = vperm.slane %v357_v40, %v393_v38 }
  0xba   : > { %v408_v48 = vperm.slane %v377_v42, %v397_v43  ;;  %v407_v49 = vsel %vm395_vm2, %v406_v41, %v405_v45 }
  0xbb   : > { %v396_v50 = vsel %vm395_vm2, %v394_v44, %v392_v47 }
  0xbc   : > { %v409_v55 = vsel %vm399_vm3, %v408_v48, %v407_v49  ;;  %v400_v58 = vsel %vm399_vm3, %v398_v52, %v396_v50 }
  0xbf   : > { %v381_v51 = vpop.xlane.xlu1 %380 }
  0xc0   : > { %v410_v53 = vperm.slane %v381_v51, %v401_v46  ;;  %v365_v54 = vpop.xlane.xlu0 %364 }
  0xc1   : > { %v402_v56 = vperm.slane %v365_v54, %v401_v46 }
  0xc2   : > { %v411_v57 = vsel %vm403_vm4, %v410_v53, %v409_v55 }
  0xc3   : > { %v404_v60 = vsel %vm403_vm4, %v402_v56, %v400_v58  ;;  %421 = sbr.rel (%p628_p1) target bundleno = 598 (0x256), region = 52 }
  0xc4   : > { %v413_v61 = vsel %vm412_vm5, %v411_v57, %v404_v60 }
  0xc5   : > { %v415_v62 = vadd.f32 %v413_v61, %v332_v59 }
  0xc7   : > { %417 = vst.msk [vmem:[#allocation2] sm:$0x3] %vm416_vm6, %v415_v62 }
  0xc8   : > { %v427_v63 = vld [vmem:[#allocation6 + $0x18] sm:$0xff]  ;;  %v426_v0 = vld [vmem:[#allocation6 + $0x10] sm:$0xff]  ;;  %v425_v2 = vld [vmem:[#allocation6 + $0x8] sm:$0xff]  ;;  %vm432_vm7 = vcmask 261120   ;;  %v857_v5 = vmov 0   ;;  %vm457_vm8 = vcmp.lt.s32.totalorder %v1021_v37, 16 }
  0xc9   : > { %448 = vmatpush.msra.mxu0 %v427_v63  ;;  %v424_v3 = vld [vmem:[#allocation6] sm:$0xff]  ;;  %723 = vset.pattern.permute.xlu0 %v857_v5  ;;  %v724_v6 = vld [vmem:[%s1068_s2] ss:$0 sm:$0xff]  ;;  %vm459_vm9 = vcmask 1041408   ;;  %v858_v18 = vmov 0.0   ;;  %vm484_vm11 = vcmask 1024  }
  0xca   : > { %v472_v11 = vld [vmem:[%s1069_s3] sm:$0x3] }
  0xcb   : > { %449 = vmatpush.msra.mxu0 %v426_v0 }
  0xcd   : > { %450 = vmatpush.msra.mxu0 %v425_v2 }
  0xce   : > { %v422_v1 = vld [vmem:[#allocation2] sm:$0x3] }
  0xcf   : > { %v423_v4 = vmul.f32 0.0025, %v422_v1  ;;  %451 = vmatpush.msra.mxu0 %v424_v3 }
  0xd1   : > { %629 = vmatmul.msk.f32.vlgmr.msra.gmra.mxu0 %vm432_vm7, %v423_v4 }
 0x14e   : > { %v453_v7 = vpop.f32.mrf.mxu0 }
 0x14f   : > { %v454_v8 = vadd.f32 %v724_v6, %v453_v7 }
 0x151   : > { %456 = vst [vmem:[#allocation8] sm:$0x3] %v454_v8  ;;  %v458_v9 = vsel %vm457_vm8, %v454_v8, -1e+30 }
 0x152   : > { %v460_v10 = vsel %vm459_vm9, %v458_v9, -inf }
 0x153   : > { %461 = vmax.xlane.f32.xlu0 %v460_v10 }
 0x167   : > { %474 = vperm.xlu0 %723, %v472_v11  }
 0x1c6   : > { %v462_v12 = vpop.xlane.xlu0 %461 }
 0x1c7   : > { %v463_v13 = vsub.f32 %v458_v9, %v462_v12 }
 0x1c9   : > { %v464_v14 = vmul.f32 1.442695, %v463_v13 }
 0x1cb   : > { %725 = vpow2.f32 %v464_v14 }
 0x1d1   : > { %v726_v15 = vpop.eup %725 }
 0x1d2   : > { %v466_v16 = vsel %vm459_vm9, %v726_v15, 0.0 }
 0x1d3   : > { %467 = vadd.xlane.f32.xlu1 %v466_v16 }
 0x1d9   : > { %v475_v17 = vpop.permute.xlu0 %474 }
 0x1da   : > { %vm476_vm10 = vcmp.eq.s32.totalorder %v1021_v37, %v475_v17 }
 0x1db   : > { %v630_v19 = vsel %vm476_vm10, 1.0, %v858_v18 }
 0x1dc   : > { %v479_v20 = vmul.f32 %v630_v19, %v454_v8 }
 0x1de   : > { %v480_v21 = vsel %vm459_vm9, %v479_v20, 0.0 }
 0x1df   : > { %481 = vadd.xlane.f32.xlu1 %v480_v21 }
 0x246   : > { %v468_v22 = vpop.xlane.xlu1 %467 }
 0x247   : > { %727 = vlog2.f32 %v468_v22 }
 0x24d   : > { %v728_v23 = vpop.eup %727 }
 0x24e   : > { %v470_v24 = vmul.f32 0.6931472, %v728_v23 }
 0x250   : > { %v471_v25 = vadd.f32 %v470_v24, %v462_v12 }
 0x252   : > { %v482_v26 = vpop.xlane.xlu1 %481 }
 0x253   : > { %v483_v27 = vsub.f32 %v471_v25, %v482_v26 }
 0x255   : > { %485 = vst.msk [vmem:[%s1071_s5] sm:$0x3] %vm484_vm11, %v483_v27 }
 0x256 PF: > { %p660_p2 = scmp.eq.s32.totalorder %s614_s24, 1  ;;  %s500_s16 = sshll.u32 %s1070_s4, 4  ;;  %s501_s16 = int_to_ptr.hbm [resolvable:$true] %s500_s16 }
 0x257   : > { %s859_s26 = smov [#allocation8]  }
 0x258   : > { %s498_s17 = sshll.u32 %s859_s26, 4  ;;  %s499_s17 = int_to_ptr.vmem [resolvable:$true] %s498_s17 }
 0x259   : > { %651 = dma.vmem_to_hbm [thread:$0]  (%p660_p2), %s499_s17, 32, %s501_s16, [#allocation5]  }
 0x25a   : > { %820 = dma.done.wait (%p660_p2), [#allocation5], 32  }
 0x25b   : > { %822 = vsyncadd (%p660_p2), [#allocation5], 4294967264 }
 0x25c PF: > { %s21_s23 = sadd.s32 1, %s845_s23   ;;  %s1076_s18 = smov %s829_s19 }
 0x25d   : > { %p18_p3 = scmp.ge.s32.totalorder %s21_s23, 4   ;;  %s1077_s19 = smov %s833_s20 }
 0x25e   : > { %s1078_s20 = smov %s948_s6  ;;  %s1079_s21 = smov %s841_s22 }
 0x25f   : > { %s1080_s22 = smov %s1082_s25  ;;  %20 = sbr.rel (!%p18_p3) target bundleno = 6 (0x6), region = 106 }
 0x264   :  { %524 = vsyncpa [#allocation4], 1 }
 0x265   :  { %526 = vsyncpa [#allocation4 + $0x1], 1 }
 0x266   :  { %527 = vsyncpa [#allocation7], 1 }
 0x267   :  { %528 = vsyncpa [#allocation5], 1 }
 0x268   :  { %530 = vsyncpa [#allocation5 + $0x1], 1 }

</bundles_post_ra>
